<compile_context>
chip_gen: v6e
topology: v6e:2x2x1
jax: 0.10.0
libtpu: 0.0.40
codegen_flags: <defaults>
</compile_context>

<pallas_src>
import functools

import jax
import jax.numpy as jnp
from jax.experimental import pallas as pl
from jax.experimental.pallas import tpu as pltpu


# ----------------------------------------------------------------------------
# Fused kernel: (Linear -> ReLU -> Linear -> ReLU) on one batch tile.
# ----------------------------------------------------------------------------
def _fused_mlp_kernel(x_ref, w1_ref, b1_ref, w2_ref, b2_ref, o_ref):
    # x_ref : (TB, F)      w1_ref: (F, H)   b1_ref: (1, H)
    # w2_ref: (H, O)       b2_ref: (1, O)   o_ref : (TB, O)
    h = jnp.dot(x_ref[...], w1_ref[...], preferred_element_type=jnp.float32)
    h = jnp.maximum(h + b1_ref[...], 0.0)                 # Linear1 + ReLU
    o = jnp.dot(h, w2_ref[...], preferred_element_type=jnp.float32)
    o_ref[...] = jnp.maximum(o + b2_ref[...], 0.0).astype(o_ref.dtype)  # Linear2 + ReLU


def fashion_mnist_v1_forward(x, params, *, batch_tile=128):
    """x: (B, C, H, W) or (B, F).  params: w1 (F,H), b1 (H,), w2 (H,O), b2 (O,)."""
    B = x.shape[0]
    # nn.Flatten(): flatten everything but batch, in (C, H, W) order — for a
    # contiguous NCHW array this reshape is free at trace time.
    xf = x.reshape(B, -1).astype(jnp.float32)
    F = xf.shape[1]

    w1 = params["w1"].astype(jnp.float32)            # (F, H)   (= torch W1.T)
    b1 = params["b1"].reshape(1, -1).astype(jnp.float32)
    w2 = params["w2"].astype(jnp.float32)            # (H, O)   (= torch W2.T)
    b2 = params["b2"].reshape(1, -1).astype(jnp.float32)
    Hid = w1.shape[1]
    Out = w2.shape[1]

    # Batch tiling: one grid step per TB rows; pad B up if needed so the
    # BlockSpec divides evenly.  Weights use constant index_maps -> resident.
    TB = min(batch_tile, B)
    Bp = pl.cdiv(B, TB) * TB
    if Bp != B:
        xf = jnp.pad(xf, ((0, Bp - B), (0, 0)))

    out = pl.pallas_call(
        _fused_mlp_kernel,
        out_shape=jax.ShapeDtypeStruct((Bp, Out), jnp.float32),
        grid_spec=pl.GridSpec(
            grid=(Bp // TB,),
            in_specs=[
                pl.BlockSpec((TB, F), lambda i: (i, 0)),      # activations
                pl.BlockSpec((F, Hid), lambda i: (0, 0)),     # w1 (resident)
                pl.BlockSpec((1, Hid), lambda i: (0, 0)),     # b1 (resident)
                pl.BlockSpec((Hid, Out), lambda i: (0, 0)),   # w2 (resident)
                pl.BlockSpec((1, Out), lambda i: (0, 0)),     # b2 (resident)
            ],
            out_specs=pl.BlockSpec((TB, Out), lambda i: (i, 0)),
        ),
        compiler_params=pltpu.CompilerParams(
            dimension_semantics=("parallel",)),   # v7x: batch tiles across TCs
    )(xf, w1, b1, w2, b2)
    return out[:B]


forward_jit = jax.jit(functools.partial(fashion_mnist_v1_forward))


# ----------------------------------------------------------------------------
# Pure-JAX reference (PyTorch semantics: x @ W1.T + b1 -> ReLU -> @ W2.T + b2 -> ReLU)
# ----------------------------------------------------------------------------
def reference(x, params):
    xf = x.reshape(x.shape[0], -1).astype(jnp.float32)
    h = jax.nn.relu(xf @ params["w1"] + params["b1"])
    return jax.nn.relu(h @ params["w2"] + params["b2"])


if __name__ == "__main__":
    # FashionMNIST-like small shapes: B=8 images of (1, 28, 28)
    #  -> input_shape = 784, hidden_units = 32, output_shape = 10.
    B, C, H, W = 8, 1, 28, 28
    F_IN, HID, OUT = C * H * W, 32, 10

    key = jax.random.PRNGKey(0)
    k_x, k_w1, k_b1, k_w2, k_b2 = jax.random.split(key, 5)

    params = {
        # Stored already transposed to (in, out) — equivalent to a one-time
        # trace-time transpose of the PyTorch (out, in) weights.
        "w1": 0.05 * jax.random.normal(k_w1, (F_IN, HID), jnp.float32),
        "b1": 0.05 * jax.random.normal(k_b1, (HID,), jnp.float32),
        "w2": 0.05 * jax.random.normal(k_w2, (HID, OUT), jnp.float32),
        "b2": 0.05 * jax.random.normal(k_b2, (OUT,), jnp.float32),
    }
    x = jax.random.normal(k_x, (B, C, H, W), jnp.float32)

    out = jax.block_until_ready(forward_jit(x, params))
    ref = jax.block_until_ready(reference(x, params))

    assert out.shape == (B, OUT), out.shape
    assert jnp.allclose(out, ref, atol=1e-5, rtol=1e-5), \
        f"max abs err {jnp.max(jnp.abs(out - ref))}"

    print("KERNEL_OK")
</pallas_src>

<mosaic_0001>
module attributes {stable_mosaic.version = 11 : i64} {
  func.func @_fused_mlp_kernel(%arg0: i32, %arg1: memref<8x784xf32, #tpu.memory_space<vmem>>, %arg2: memref<784x32xf32, #tpu.memory_space<vmem>>, %arg3: memref<1x32xf32, #tpu.memory_space<vmem>>, %arg4: memref<32x10xf32, #tpu.memory_space<vmem>>, %arg5: memref<1x10xf32, #tpu.memory_space<vmem>>, %arg6: memref<8x10xf32, #tpu.memory_space<vmem>>) attributes {dimension_semantics = [#tpu.dimension_semantics<parallel>], iteration_bounds = array<i64: 1>, scalar_prefetch = 0 : i64, scratch_operands = 0 : i64, tpu.core_type = #tpu.core_type<tc>, window_params = [{transform_indices = @transform_0, window_bounds = array<i64: 8, 784>}, {pipeline_mode = #tpu.pipeline_mode<synchronous>, transform_indices = @transform_1, window_bounds = array<i64: 784, 32>}, {pipeline_mode = #tpu.pipeline_mode<synchronous>, transform_indices = @transform_2, window_bounds = array<i64: 1, 32>}, {pipeline_mode = #tpu.pipeline_mode<synchronous>, transform_indices = @transform_3, window_bounds = array<i64: 32, 10>}, {pipeline_mode = #tpu.pipeline_mode<synchronous>, transform_indices = @transform_4, window_bounds = array<i64: 1, 10>}, {transform_indices = @transform_5, window_bounds = array<i64: 8, 10>}]} {
    %c0 = arith.constant 0 : index
    %c0_0 = arith.constant 0 : index
    %0 = vector.load %arg1[%c0, %c0_0] : memref<8x784xf32, #tpu.memory_space<vmem>>, vector<8x784xf32>
    %c0_1 = arith.constant 0 : index
    %c0_2 = arith.constant 0 : index
    %1 = vector.load %arg2[%c0_1, %c0_2] : memref<784x32xf32, #tpu.memory_space<vmem>>, vector<784x32xf32>
    %cst = arith.constant dense<0.000000e+00> : vector<8x32xf32>
    %2 = tpu.matmul %0, %1, %cst {dimension_numbers = #tpu.dot_dimension_numbers<[1], [0], [0], [1], [0, 0, 1, 1], [], []>} : vector<8x784xf32>, vector<784x32xf32>, vector<8x32xf32> -> vector<8x32xf32>
    %c0_3 = arith.constant 0 : index
    %c0_4 = arith.constant 0 : index
    %3 = vector.load %arg3[%c0_3, %c0_4] : memref<1x32xf32, #tpu.memory_space<vmem>>, vector<1x32xf32>
    %4 = vector.broadcast %3 : vector<1x32xf32> to vector<8x32xf32>
    %5 = arith.addf %2, %4 : vector<8x32xf32>
    %cst_5 = arith.constant 0.000000e+00 : f32
    %6 = vector.broadcast %cst_5 : f32 to vector<8x32xf32>
    %7 = arith.maximumf %5, %6 : vector<8x32xf32>
    %c0_6 = arith.constant 0 : index
    %c0_7 = arith.constant 0 : index
    %8 = vector.load %arg4[%c0_6, %c0_7] : memref<32x10xf32, #tpu.memory_space<vmem>>, vector<32x10xf32>
    %cst_8 = arith.constant dense<0.000000e+00> : vector<8x10xf32>
    %9 = tpu.matmul %7, %8, %cst_8 {dimension_numbers = #tpu.dot_dimension_numbers<[1], [0], [0], [1], [0, 0, 1, 1], [], []>} : vector<8x32xf32>, vector<32x10xf32>, vector<8x10xf32> -> vector<8x10xf32>
    %c0_9 = arith.constant 0 : index
    %c0_10 = arith.constant 0 : index
    %10 = vector.load %arg5[%c0_9, %c0_10] : memref<1x10xf32, #tpu.memory_space<vmem>>, vector<1x10xf32>
    %11 = vector.broadcast %10 : vector<1x10xf32> to vector<8x10xf32>
    %12 = arith.addf %9, %11 : vector<8x10xf32>
    %cst_11 = arith.constant 0.000000e+00 : f32
    %13 = vector.broadcast %cst_11 : f32 to vector<8x10xf32>
    %14 = arith.maximumf %12, %13 : vector<8x10xf32>
    %c0_12 = arith.constant 0 : index
    %c0_13 = arith.constant 0 : index
    %15 = vector.load %arg6[%c0_12, %c0_13] : memref<8x10xf32, #tpu.memory_space<vmem>>, vector<8x10xf32>
    tpu.vector_store %arg6[%c0_12, %c0_13], %14 {strides = array<i32>} : memref<8x10xf32, #tpu.memory_space<vmem>>, vector<8x10xf32>,
    return
  }
  func.func @transform_0(%arg0: i32) -> (i32, i32) {
    %c0_i32 = arith.constant 0 : i32
    %c0_i32_0 = arith.constant 0 : i32
    return %arg0, %c0_i32 : i32, i32
  }
  func.func @transform_1(%arg0: i32) -> (i32, i32) {
    %c0_i32 = arith.constant 0 : i32
    %c0_i32_0 = arith.constant 0 : i32
    %c0_i32_1 = arith.constant 0 : i32
    return %c0_i32, %c0_i32_0 : i32, i32
  }
  func.func @transform_2(%arg0: i32) -> (i32, i32) {
    %c0_i32 = arith.constant 0 : i32
    %c0_i32_0 = arith.constant 0 : i32
    %c0_i32_1 = arith.constant 0 : i32
    return %c0_i32, %c0_i32_0 : i32, i32
  }
  func.func @transform_3(%arg0: i32) -> (i32, i32) {
    %c0_i32 = arith.constant 0 : i32
    %c0_i32_0 = arith.constant 0 : i32
    %c0_i32_1 = arith.constant 0 : i32
    return %c0_i32, %c0_i32_0 : i32, i32
  }
  func.func @transform_4(%arg0: i32) -> (i32, i32) {
    %c0_i32 = arith.constant 0 : i32
    %c0_i32_0 = arith.constant 0 : i32
    %c0_i32_1 = arith.constant 0 : i32
    return %c0_i32, %c0_i32_0 : i32, i32
  }
  func.func @transform_5(%arg0: i32) -> (i32, i32) {
    %c0_i32 = arith.constant 0 : i32
    %c0_i32_0 = arith.constant 0 : i32
    return %arg0, %c0_i32 : i32, i32
  }
}

</mosaic_0001>

<bundles_post_ra>
// kernel: fashion_mnist_v1_forward.1
= control target key start
LH: loop header
LB: loop body
LE: loop exit
PB: predicated region body
PF: predicated region fallthrough
CT: control target
= control target key end

     0   :  { %s1057_s0 = inlined_call_operand.vmem [shape: f32[8,784], index: 0, kind: input, shape index: {}]   ;;  %s1058_s1 = inlined_call_operand.vmem [shape: f32[784,32], index: 1, kind: input, shape index: {}]   ;;  %s1059_s2 = inlined_call_operand.vmem [shape: f32[1,32], index: 2, kind: input, shape index: {}]   ;;  %s1060_s3 = inlined_call_operand.vmem [shape: f32[32,10], index: 3, kind: input, shape index: {}]   ;;  %s1061_s4 = inlined_call_operand.vmem [shape: f32[1,10], index: 4, kind: input, shape index: {}]   ;;  %s1062_s5 = inlined_call_operand.hbm [shape: f32[8,10], index: 5, kind: output, shape index: {}]  }
   0x1   :  { %v59_v0 = vld [vmem:[%s1058_s1 + $0xf8] sm:$0xff]  ;;  %v58_v2 = vld [vmem:[%s1058_s1 + $0xf0] sm:$0xff]  ;;  %v57_v6 = vld [vmem:[%s1058_s1 + $0xe8] sm:$0xff] }
   0x2   :  { %v43_v1 = vld [vmem:[%s1058_s1 + $0x78] sm:$0xff]  ;;  %524 = vmatprep.subr.mxu0 %v59_v0  ;;  %v42_v4 = vld [vmem:[%s1058_s1 + $0x70] sm:$0xff]  ;;  %v41_v8 = vld [vmem:[%s1058_s1 + $0x68] sm:$0xff] }
   0x3   :  { %v91_v3 = vld [vmem:[%s1058_s1 + $0x1f8] sm:$0xff]  ;;  %525 = vmatpush3.msra.mxu0 %v43_v1  ;;  %v90_v7 = vld [vmem:[%s1058_s1 + $0x1f0] sm:$0xff]  ;;  %v89_v10 = vld [vmem:[%s1058_s1 + $0x1e8] sm:$0xff] }
   0x4   :  { %v75_v5 = vld [vmem:[%s1058_s1 + $0x178] sm:$0xff]  ;;  %559 = vmatprep.subr.mxu1 %v91_v3  ;;  %526 = vmatprep.subr.mxu0 %v58_v2  ;;  %v74_v9 = vld [vmem:[%s1058_s1 + $0x170] sm:$0xff]  ;;  %v56_v11 = vld [vmem:[%s1058_s1 + $0xe0] sm:$0xff] }
   0x5   :  { %560 = vmatpush3.msra.mxu1 %v75_v5  ;;  %527 = vmatpush3.msra.mxu0 %v42_v4  ;;  %v73_v12 = vld [vmem:[%s1058_s1 + $0x168] sm:$0xff]  ;;  %v40_v13 = vld [vmem:[%s1058_s1 + $0x60] sm:$0xff]  ;;  %v55_v15 = vld [vmem:[%s1058_s1 + $0xd8] sm:$0xff] }
   0x6   :  { %561 = vmatprep.subr.mxu1 %v90_v7  ;;  %528 = vmatprep.subr.mxu0 %v57_v6  ;;  %v88_v14 = vld [vmem:[%s1058_s1 + $0x1e0] sm:$0xff]  ;;  %v39_v17 = vld [vmem:[%s1058_s1 + $0x58] sm:$0xff]  ;;  %v54_v19 = vld [vmem:[%s1058_s1 + $0xd0] sm:$0xff] }
   0x7   :  { %562 = vmatpush3.msra.mxu1 %v74_v9  ;;  %529 = vmatpush3.msra.mxu0 %v41_v8  ;;  %v72_v16 = vld [vmem:[%s1058_s1 + $0x160] sm:$0xff]  ;;  %v87_v18 = vld [vmem:[%s1058_s1 + $0x1d8] sm:$0xff]  ;;  %v38_v21 = vld [vmem:[%s1058_s1 + $0x50] sm:$0xff] }
   0x8   :  { %563 = vmatprep.subr.mxu1 %v89_v10  ;;  %530 = vmatprep.subr.mxu0 %v56_v11  ;;  %v71_v20 = vld [vmem:[%s1058_s1 + $0x158] sm:$0xff]  ;;  %v86_v22 = vld [vmem:[%s1058_s1 + $0x1d0] sm:$0xff]  ;;  %v53_v23 = vld [vmem:[%s1058_s1 + $0xc8] sm:$0xff] }
   0x9   :  { %564 = vmatpush3.msra.mxu1 %v73_v12  ;;  %531 = vmatpush3.msra.mxu0 %v40_v13  ;;  %v70_v24 = vld [vmem:[%s1058_s1 + $0x150] sm:$0xff]  ;;  %v37_v25 = vld [vmem:[%s1058_s1 + $0x48] sm:$0xff]  ;;  %v52_v27 = vld [vmem:[%s1058_s1 + $0xc0] sm:$0xff] }
   0xa   :  { %565 = vmatprep.subr.mxu1 %v88_v14  ;;  %532 = vmatprep.subr.mxu0 %v55_v15  ;;  %v85_v26 = vld [vmem:[%s1058_s1 + $0x1c8] sm:$0xff]  ;;  %v36_v29 = vld [vmem:[%s1058_s1 + $0x40] sm:$0xff]  ;;  %v51_v31 = vld [vmem:[%s1058_s1 + $0xb8] sm:$0xff] }
   0xb   :  { %566 = vmatpush3.msra.mxu1 %v72_v16  ;;  %533 = vmatpush3.msra.mxu0 %v39_v17  ;;  %v69_v28 = vld [vmem:[%s1058_s1 + $0x148] sm:$0xff]  ;;  %v84_v30 = vld [vmem:[%s1058_s1 + $0x1c0] sm:$0xff]  ;;  %v35_v33 = vld [vmem:[%s1058_s1 + $0x38] sm:$0xff] }
   0xc   :  { %567 = vmatprep.subr.mxu1 %v87_v18  ;;  %534 = vmatprep.subr.mxu0 %v54_v19  ;;  %v68_v32 = vld [vmem:[%s1058_s1 + $0x140] sm:$0xff]  ;;  %v83_v34 = vld [vmem:[%s1058_s1 + $0x1b8] sm:$0xff]  ;;  %v50_v35 = vld [vmem:[%s1058_s1 + $0xb0] sm:$0xff] }
   0xd   :  { %568 = vmatpush3.msra.mxu1 %v71_v20  ;;  %535 = vmatpush3.msra.mxu0 %v38_v21  ;;  %v67_v36 = vld [vmem:[%s1058_s1 + $0x138] sm:$0xff]  ;;  %v34_v37 = vld [vmem:[%s1058_s1 + $0x30] sm:$0xff]  ;;  %v49_v39 = vld [vmem:[%s1058_s1 + $0xa8] sm:$0xff] }
   0xe   :  { %569 = vmatprep.subr.mxu1 %v86_v22  ;;  %536 = vmatprep.subr.mxu0 %v53_v23  ;;  %v82_v38 = vld [vmem:[%s1058_s1 + $0x1b0] sm:$0xff]  ;;  %v33_v41 = vld [vmem:[%s1058_s1 + $0x28] sm:$0xff]  ;;  %v48_v43 = vld [vmem:[%s1058_s1 + $0xa0] sm:$0xff] }
   0xf   :  { %570 = vmatpush3.msra.mxu1 %v70_v24  ;;  %537 = vmatpush3.msra.mxu0 %v37_v25  ;;  %v66_v40 = vld [vmem:[%s1058_s1 + $0x130] sm:$0xff]  ;;  %v81_v42 = vld [vmem:[%s1058_s1 + $0x1a8] sm:$0xff]  ;;  %v32_v45 = vld [vmem:[%s1058_s1 + $0x20] sm:$0xff] }
  0x10   :  { %571 = vmatprep.subr.mxu1 %v85_v26  ;;  %538 = vmatprep.subr.mxu0 %v52_v27  ;;  %v65_v44 = vld [vmem:[%s1058_s1 + $0x128] sm:$0xff]  ;;  %v80_v46 = vld [vmem:[%s1058_s1 + $0x1a0] sm:$0xff]  ;;  %v47_v47 = vld [vmem:[%s1058_s1 + $0x98] sm:$0xff] }
  0x11   :  { %572 = vmatpush3.msra.mxu1 %v69_v28  ;;  %539 = vmatpush3.msra.mxu0 %v36_v29  ;;  %v64_v48 = vld [vmem:[%s1058_s1 + $0x120] sm:$0xff]  ;;  %v31_v49 = vld [vmem:[%s1058_s1 + $0x18] sm:$0xff]  ;;  %v46_v51 = vld [vmem:[%s1058_s1 + $0x90] sm:$0xff] }
  0x12   :  { %573 = vmatprep.subr.mxu1 %v84_v30  ;;  %540 = vmatprep.subr.mxu0 %v51_v31  ;;  %v79_v50 = vld [vmem:[%s1058_s1 + $0x198] sm:$0xff]  ;;  %v30_v53 = vld [vmem:[%s1058_s1 + $0x10] sm:$0xff]  ;;  %v45_v55 = vld [vmem:[%s1058_s1 + $0x88] sm:$0xff] }
  0x13   :  { %574 = vmatpush3.msra.mxu1 %v68_v32  ;;  %541 = vmatpush3.msra.mxu0 %v35_v33  ;;  %v63_v52 = vld [vmem:[%s1058_s1 + $0x118] sm:$0xff]  ;;  %v78_v54 = vld [vmem:[%s1058_s1 + $0x190] sm:$0xff]  ;;  %v29_v57 = vld [vmem:[%s1058_s1 + $0x8] sm:$0xff] }
  0x14   :  { %575 = vmatprep.subr.mxu1 %v83_v34  ;;  %542 = vmatprep.subr.mxu0 %v50_v35  ;;  %v62_v56 = vld [vmem:[%s1058_s1 + $0x110] sm:$0xff]  ;;  %v77_v58 = vld [vmem:[%s1058_s1 + $0x188] sm:$0xff]  ;;  %v44_v59 = vld [vmem:[%s1058_s1 + $0x80] sm:$0xff] }
  0x15   :  { %576 = vmatpush3.msra.mxu1 %v67_v36  ;;  %543 = vmatpush3.msra.mxu0 %v34_v37  ;;  %v22_v60 = vld [vmem:[%s1057_s0 + $0x8] sm:$0xff]  ;;  %v28_v61 = vld [vmem:[%s1058_s1] sm:$0xff]  ;;  %v123_v1 = vld [vmem:[%s1058_s1 + $0x2f8] sm:$0xff] }
  0x16   :  { %577 = vmatprep.subr.mxu1 %v82_v38  ;;  %544 = vmatprep.subr.mxu0 %v49_v39  ;;  %v61_v62 = vld [vmem:[%s1058_s1 + $0x108] sm:$0xff]  ;;  %v21_v63 = vld [vmem:[%s1057_s0] sm:$0xff]  ;;  %v24_v3 = vld [vmem:[%s1057_s0 + $0x18] sm:$0xff] }
  0x17   :  { %578 = vmatpush3.msra.mxu1 %v66_v40  ;;  %545 = vmatpush3.msra.mxu0 %v33_v41  ;;  %v76_v0 = vld [vmem:[%s1058_s1 + $0x180] sm:$0xff]  ;;  %v107_v4 = vld [vmem:[%s1058_s1 + $0x278] sm:$0xff]  ;;  %v23_v5 = vld [vmem:[%s1057_s0 + $0x10] sm:$0xff] }
  0x18   :  { %579 = vmatprep.subr.mxu1 %v81_v42  ;;  %546 = vmatprep.subr.mxu0 %v48_v43  ;;  %v60_v2 = vld [vmem:[%s1058_s1 + $0x100] sm:$0xff]  ;;  %v122_v6 = vld [vmem:[%s1058_s1 + $0x2f0] sm:$0xff]  ;;  %v26_v8 = vld [vmem:[%s1057_s0 + $0x28] sm:$0xff] }
  0x19   :  { %580 = vmatpush3.msra.mxu1 %v65_v44  ;;  %547 = vmatpush3.msra.mxu0 %v32_v45  ;;  %v106_v7 = vld [vmem:[%s1058_s1 + $0x270] sm:$0xff]  ;;  %v121_v9 = vld [vmem:[%s1058_s1 + $0x2e8] sm:$0xff] }
  0x1a   :  { %581 = vmatprep.subr.mxu1 %v80_v46  ;;  %548 = vmatprep.subr.mxu0 %v47_v47 }
  0x1b   :  { %582 = vmatpush3.msra.mxu1 %v64_v48  ;;  %549 = vmatpush3.msra.mxu0 %v31_v49 }
  0x1c   :  { %583 = vmatprep.subr.mxu1 %v79_v50  ;;  %550 = vmatprep.subr.mxu0 %v46_v51 }
  0x1d   :  { %584 = vmatpush3.msra.mxu1 %v63_v52  ;;  %551 = vmatpush3.msra.mxu0 %v30_v53 }
  0x1e   :  { %585 = vmatprep.subr.mxu1 %v78_v54  ;;  %552 = vmatprep.subr.mxu0 %v45_v55 }
  0x1f   :  { %586 = vmatpush3.msra.mxu1 %v62_v56  ;;  %553 = vmatpush3.msra.mxu0 %v29_v57 }
  0x20   :  { %587 = vmatprep.subr.mxu1 %v77_v58  ;;  %554 = vmatprep.subr.mxu0 %v44_v59 }
  0x21   :  { %201 = vmatprep.mubr.f32.mxu0 %v22_v60  ;;  %555 = vmatpush3.msra.mxu0 %v28_v61 }
  0x22   :  { %588 = vmatpush3.msra.mxu1 %v61_v62  ;;  %202 = vmatmul.mubr.f32.vlgmr.msra.gmra.mxu0 %v21_v63 }
  0x23   :  { %589 = vmatprep.subr.mxu1 %v76_v0  ;;  %594 = vmatprep.subr.mxu0 %v123_v1 }
  0x24   :  { %590 = vmatpush3.msra.mxu1 %v60_v2  ;;  %271 = vmatprep.mubr.f32.mxu1 %v24_v3 }
  0x25   :  { %595 = vmatpush3.msra.mxu0 %v107_v4 }
  0x26   :  { %10 = vsyncpa [#allocation3], 0  ;;  %272 = vmatmul.mubr.f32.vlgmr.msra.gmra.mxu1 %v23_v5  ;;  %596 = vmatprep.subr.mxu0 %v122_v6  ;;  %v105_v10 = vld [vmem:[%s1058_s1 + $0x268] sm:$0xff]  ;;  %v120_v12 = vld [vmem:[%s1058_s1 + $0x2e0] sm:$0xff]  ;;  %v680_v14 = vmov 0.0   ;;  %vm133_vm0 = vcmask 130048  }
  0x27   :  { %v125_v11 = vld [vmem:[%s1058_s1 + $0x308] sm:$0xff]  ;;  %597 = vmatpush3.msra.mxu0 %v106_v7  ;;  %341 = vmatprep.mubr.f32.mxu0 %v26_v8  ;;  %v104_v13 = vld [vmem:[%s1058_s1 + $0x260] sm:$0xff]  ;;  %v119_v16 = vld [vmem:[%s1058_s1 + $0x2d8] sm:$0xff]  ;;  %vm681_vm1 = vmmov 0   ;;  %vm429_vm2 = vcmask 261120   ;;  %s682_s12 = smov [#allocation2]  }
  0x28   :  { %598 = vmatprep.subr.mxu0 %v121_v9  ;;  %637 = vmatprep.subr.mxu1 %v680_v14  ;;  %v124_v15 = vld [vmem:[%s1058_s1 + $0x300] sm:$0xff]  ;;  %v103_v17 = vld [vmem:[%s1058_s1 + $0x258] sm:$0xff]  ;;  %v27_v18 = vld [vmem:[%s1057_s0 + $0x30] sm:$0xff]  ;;  %s512_s13 = sshll.u32 %s682_s12, 4  ;;  %vm504_vm3 = vcmask 80896   ;;  %s513_s13 = int_to_ptr.vmem [resolvable:$true] %s512_s13 }
  0x29   :  { %599 = vmatpush3.msra.mxu0 %v105_v10  ;;  %638 = vmatpush3.msra.mxu1 %v125_v11  ;;  %v118_v19 = vld [vmem:[%s1058_s1 + $0x2d0] sm:$0xff]  ;;  %v117_v21 = vld [vmem:[%s1058_s1 + $0x2c8] sm:$0xff]  ;;  %v116_v23 = vld [vmem:[%s1058_s1 + $0x2c0] sm:$0xff]  ;;  %p663_p1 = scmp.lt.s32.totalorder %s513_s13, %s513_s13 }
  0x2a   :  { %600 = vmatprep.subr.mxu0 %v120_v12  ;;  %639 = vmatprep.subr.mxu1 %v680_v14  ;;  %v102_v20 = vld [vmem:[%s1058_s1 + $0x250] sm:$0xff]  ;;  %v101_v22 = vld [vmem:[%s1058_s1 + $0x248] sm:$0xff]  ;;  %v100_v24 = vld [vmem:[%s1058_s1 + $0x240] sm:$0xff] }
  0x2b   :  { %601 = vmatpush3.msra.mxu0 %v104_v13  ;;  %640 = vmatpush3.msra.mxu1 %v124_v15  ;;  %v115_v25 = vld [vmem:[%s1058_s1 + $0x2b8] sm:$0xff]  ;;  %v114_v27 = vld [vmem:[%s1058_s1 + $0x2b0] sm:$0xff]  ;;  %v113_v29 = vld [vmem:[%s1058_s1 + $0x2a8] sm:$0xff] }
  0x2c   :  { %602 = vmatprep.subr.mxu0 %v119_v16  ;;  %641 = vmatprep.mubr.msk.f32.mxu1 %vm681_vm1, %v680_v14  ;;  %v99_v26 = vld [vmem:[%s1058_s1 + $0x238] sm:$0xff]  ;;  %v98_v28 = vld [vmem:[%s1058_s1 + $0x230] sm:$0xff]  ;;  %v97_v30 = vld [vmem:[%s1058_s1 + $0x228] sm:$0xff] }
  0x2d   :  { %603 = vmatpush3.msra.mxu0 %v103_v17  ;;  %642 = vmatmul.mubr.msk.f32.vlgmr.msra.gmra.mxu1 %vm133_vm0, %v27_v18  ;;  %v112_v31 = vld [vmem:[%s1058_s1 + $0x2a0] sm:$0xff]  ;;  %v111_v33 = vld [vmem:[%s1058_s1 + $0x298] sm:$0xff]  ;;  %v110_v35 = vld [vmem:[%s1058_s1 + $0x290] sm:$0xff] }
  0x2e   :  { %604 = vmatprep.subr.mxu0 %v118_v19  ;;  %644 = vmatprep.subr.mxu1 %v680_v14  ;;  %v96_v32 = vld [vmem:[%s1058_s1 + $0x220] sm:$0xff]  ;;  %v95_v34 = vld [vmem:[%s1058_s1 + $0x218] sm:$0xff]  ;;  %v94_v36 = vld [vmem:[%s1058_s1 + $0x210] sm:$0xff] }
  0x2f   :  { %605 = vmatpush3.msra.mxu0 %v102_v20  ;;  %652 = vmatprep.mubr.msk.f32.mxu1 %vm681_vm1, %v680_v14  ;;  %v109_v37 = vld [vmem:[%s1058_s1 + $0x288] sm:$0xff]  ;;  %v108_v39 = vld [vmem:[%s1058_s1 + $0x280] sm:$0xff]  ;;  %v421_v42 = vld [vmem:[%s1060_s3 + $0x18] sm:$0xff] }
  0x30   :  { %606 = vmatprep.subr.mxu0 %v117_v21  ;;  %v93_v38 = vld [vmem:[%s1058_s1 + $0x208] sm:$0xff]  ;;  %v92_v40 = vld [vmem:[%s1058_s1 + $0x200] sm:$0xff]  ;;  %645 = vmatpush3.msra.mxu1 %v421_v42  ;;  %v420_v43 = vld [vmem:[%s1060_s3 + $0x10] sm:$0xff] }
  0x31   :  { %607 = vmatpush3.msra.mxu0 %v101_v22  ;;  %v25_v41 = vld [vmem:[%s1057_s0 + $0x20] sm:$0xff]  ;;  %646 = vmatprep.subr.mxu1 %v680_v14  ;;  %v419_v44 = vld [vmem:[%s1060_s3 + $0x8] sm:$0xff] }
  0x32   :  { %608 = vmatprep.subr.mxu0 %v116_v23  ;;  %647 = vmatpush3.msra.mxu1 %v420_v43  ;;  %v418_v45 = vld [vmem:[%s1060_s3] sm:$0xff] }
  0x33   :  { %609 = vmatpush3.msra.mxu0 %v100_v24  ;;  %648 = vmatprep.subr.mxu1 %v680_v14  ;;  %v520_v53 = vld [vmem:[%s1059_s2] ss:$0 sm:$0xff]  ;;  %s658_s2 = scalar_lea.vmem %s513_s13, 128 }
  0x34   :  { %610 = vmatprep.subr.mxu0 %v115_v25  ;;  %649 = vmatpush3.msra.mxu1 %v419_v44  ;;  %v522_v63 = vld [vmem:[%s1061_s4] ss:$0 sm:$0xff]  ;;  %p659_p0 = scmp.ne.s32.totalorder %s513_s13, %s658_s2  ;;  %p664_p2 = scmp.lt.s32.totalorder %s658_s2, %s658_s2 }
  0x35   :  { %611 = vmatpush3.msra.mxu0 %v99_v26  ;;  %650 = vmatprep.subr.mxu1 %v680_v14 }
  0x36   :  { %612 = vmatprep.subr.mxu0 %v114_v27  ;;  %651 = vmatpush3.msra.mxu1 %v418_v45  ;;  %p665_p3 = por %p664_p2, %p663_p1 }
  0x37   :  { %613 = vmatpush3.msra.mxu0 %v98_v28 }
  0x38   :  { %614 = vmatprep.subr.mxu0 %v113_v29  ;;  %p666_p4 = pnand %p665_p3, %p659_p0 }
  0x39   :  { %615 = vmatpush3.msra.mxu0 %v97_v30 }
  0x3a   :  { %616 = vmatprep.subr.mxu0 %v112_v31 }
  0x3b   :  { %617 = vmatpush3.msra.mxu0 %v96_v32 }
  0x3c   :  { %618 = vmatprep.subr.mxu0 %v111_v33 }
  0x3d   :  { %619 = vmatpush3.msra.mxu0 %v95_v34 }
  0x3e   :  { %620 = vmatprep.subr.mxu0 %v110_v35 }
  0x3f   :  { %621 = vmatpush3.msra.mxu0 %v94_v36 }
  0x40   :  { %622 = vmatprep.subr.mxu0 %v109_v37 }
  0x41   :  { %623 = vmatpush3.msra.mxu0 %v93_v38 }
  0x42   :  { %624 = vmatprep.subr.mxu0 %v108_v39 }
  0x43   :  { %625 = vmatpush3.msra.mxu0 %v92_v40 }
  0x44   :  { %342 = vmatmul.mubr.f32.vlgmr.msra.gmra.mxu0 %v25_v41 }
  0xe2   :  { %v556_v50 = vpop.f32.mrf.mxu0 }
  0xe4   :  { %v557_v51 = vpop.f32.mrf.mxu0 }
  0xe5   :  { %v558_v52 = vadd.f32 %v557_v51, %v556_v50 }
  0xe6   :  { %v591_v46 = vpop.f32.mrf.mxu1 }
  0xe7   :  { %v204_v54 = vadd.f32 %v558_v52, %v520_v53 }
  0xe8   :  { %v592_v47 = vpop.f32.mrf.mxu1 }
  0xe9   :  { %v593_v55 = vadd.f32 %v592_v47, %v591_v46 }
  0xeb   :  { %v274_v58 = vadd.f32 %v593_v55, %v204_v54 }
  0xed   :  { %v413_v48 = vpop.f32.mrf.mxu1 }
  0xef   :  { %v643_v49 = vpop.f32.mrf.mxu1 }
 0x104   :  { %v626_v56 = vpop.f32.mrf.mxu0 }
 0x106   :  { %v627_v57 = vpop.f32.mrf.mxu0 }
 0x107   :  { %v628_v59 = vadd.f32 %v627_v57, %v626_v56 }
 0x109   :  { %v344_v60 = vadd.f32 %v628_v59, %v274_v58 }
 0x10b   :  { %v414_v61 = vadd.f32 %v413_v48, %v344_v60 }
 0x10d   :  { %v417_v62 = vmax.f32 %v414_v61, 0.0 }
 0x10f   :  { %653 = vmatmul.mubr.msk.f32.vlgmr.msra.gmra.mxu1 %vm429_vm2, %v417_v62 }
 0x1cf   :  { %v499_v0 = vpop.f32.mrf.mxu1 }
 0x1d0   :  { %v500_v1 = vadd.f32 %v522_v63, %v499_v0 }
 0x1d1   :  { %v654_v2 = vpop.f32.mrf.mxu1 }
 0x1d2   :  { %v503_v3 = vmax.f32 %v500_v1, 0.0 }
 0x1d4   :  { %505 = vst.msk [vmem:[#allocation2] sm:$0xff] %vm504_vm3, %v503_v3 }
 0x1d5   :  { %669 = shalt.err (!%p666_p4)
}
 0x1d6   :  { %515 = dma.vmem_to_hbm [thread:$0]  %s513_s13, 128, %s1062_s5, [#allocation3]  }
 0x1d7   :  { %678 = dma.done.wait [#allocation3], 128  }
 0x1d8   :  { %679 = vsyncadd [#allocation3], 4294967168 }
 0x1d9   :  { %519 = vsyncpa [#allocation3], 1 }

</bundles_post_ra>
